<compile_context>
chip_gen: v7x
topology: tpu7x:2x2x1
jax: 0.10.0
libtpu: 0.0.40
codegen_flags: <defaults>
</compile_context>

<pallas_src>
import jax
import jax.numpy as jnp
from jax import lax
from jax.experimental import pallas as pl
from jax.experimental.pallas import tpu as pltpu


def _round_up(x, m):
    return ((x + m - 1) // m) * m


def _pick_tile(dim, target, align):
    """Tile size: `target` for large dims, else the dim rounded to `align`."""
    if dim >= target:
        return target
    return _round_up(dim, align)


# --------------------------------------------------------------------------
# Generic tiled matmul:  y = A @ x   (used by forward / adjoint / fallback)
# --------------------------------------------------------------------------
def _matmul_kernel(a_ref, x_ref, o_ref):
    # Reduction axis (k) is the last grid axis; the output block index is
    # constant across it, so the f32 output tile stays resident in VMEM and
    # we accumulate directly into it (no separate scratch accumulator).
    @pl.when(pl.program_id(2) == 0)
    def _():
        o_ref[...] = jnp.zeros_like(o_ref)

    o_ref[...] += jnp.dot(
        a_ref[...], x_ref[...], preferred_element_type=jnp.float32
    )


def _matmul(A, x):
    M, K = A.shape
    K2, N = x.shape
    assert K == K2, "inner dimensions must match"

    # tm: sublane axis of A and out -> multiple of 8.
    # tn: lane axis of x and out    -> multiple of 128 (lane-dense stores).
    # tk: lane axis of A / sublane of x -> multiple of 128.
    # 512^3 f32 blocks double-buffered ~= 6 MiB VMEM: safe on every generation.
    tm = _pick_tile(M, 512, 8)
    tn = _pick_tile(N, 512, 128)
    tk = _pick_tile(K, 512, 128)

    Mp, Kp, Np = _round_up(M, tm), _round_up(K, tk), _round_up(N, tn)
    if (Mp, Kp) != (M, K):
        A = jnp.pad(A, ((0, Mp - M), (0, Kp - K)))
    if (Kp, Np) != (K, N):
        x = jnp.pad(x, ((0, Kp - K), (0, Np - N)))

    grid = (Mp // tm, Np // tn, Kp // tk)

    y_p = pl.pallas_call(
        _matmul_kernel,
        out_shape=jax.ShapeDtypeStruct((Mp, Np), jnp.float32),
        grid_spec=pltpu.PrefetchScalarGridSpec(
            num_scalar_prefetch=0,
            grid=grid,
            in_specs=[
                pl.BlockSpec((tm, tk), lambda i, j, k: (i, k)),
                pl.BlockSpec((tk, tn), lambda i, j, k: (k, j)),
            ],
            out_specs=pl.BlockSpec((tm, tn), lambda i, j, k: (i, j)),
        ),
        compiler_params=pltpu.CompilerParams(
            dimension_semantics=("parallel", "parallel", "arbitrary"),
            vmem_limit_bytes=32 * 1024 * 1024,
        ),
        cost_estimate=pl.CostEstimate(
            flops=2 * Mp * Np * Kp,
            transcendentals=0,
            bytes_accessed=4 * (Mp * Kp + Kp * Np + Mp * Np),
        ),
    )(A, x)

    if (Mp, Np) != (M, N):
        y_p = y_p[:M, :N]
    return y_p


_matmul_jit = jax.jit(_matmul)


# --------------------------------------------------------------------------
# Fused gramian:  G = A.T @ (A @ x)  in a single pallas_call.
# Grid = (N tiles, M tiles); the (K, tn) output column block stays resident in
# VMEM across the M reduction, and the (tm, tn) intermediate never hits HBM.
# --------------------------------------------------------------------------
def _gramian_kernel(a_ref, x_ref, o_ref):
    @pl.when(pl.program_id(1) == 0)
    def _():
        o_ref[...] = jnp.zeros_like(o_ref)

    a = a_ref[...]                                   # (tm, Kp)
    y = jnp.dot(a, x_ref[...], preferred_element_type=jnp.float32)  # (tm, tn)
    # A_blk^T @ y expressed directly as a dot_general (contract over tm) so no
    # explicit XLU transpose is materialized.
    o_ref[...] += lax.dot_general(
        a, y,
        dimension_numbers=(((0,), (0,)), ((), ())),
        preferred_element_type=jnp.float32,
    )


_GRAMIAN_VMEM_BUDGET = 24 * 1024 * 1024  # leave headroom under the 32 MiB limit


def _gramian_tiles(M, K, N):
    Kp = _round_up(K, 128)
    tm = _pick_tile(M, 256, 8)
    tn = _pick_tile(N, 256, 128)
    return Kp, tm, tn


def _gramian_fits_vmem(M, K, N):
    Kp, tm, tn = _gramian_tiles(M, K, N)
    # A block + x block + out block (double buffered, f32) + (tm, tn) temp.
    need = 4 * (2 * tm * Kp + 2 * Kp * tn + 2 * Kp * tn + tm * tn)
    return need <= _GRAMIAN_VMEM_BUDGET


def _gramian_fused(A, x):
    M, K = A.shape
    K2, N = x.shape
    assert K == K2, "inner dimensions must match"

    Kp, tm, tn = _gramian_tiles(M, K, N)
    Mp, Np = _round_up(M, tm), _round_up(N, tn)
    if (Mp, Kp) != (M, K):
        A = jnp.pad(A, ((0, Mp - M), (0, Kp - K)))
    if (Kp, Np) != (K, N):
        x = jnp.pad(x, ((0, Kp - K), (0, Np - N)))

    grid = (Np // tn, Mp // tm)

    g_p = pl.pallas_call(
        _gramian_kernel,
        out_shape=jax.ShapeDtypeStruct((Kp, Np), jnp.float32),
        grid_spec=pltpu.PrefetchScalarGridSpec(
            num_scalar_prefetch=0,
            grid=grid,
            in_specs=[
                pl.BlockSpec((tm, Kp), lambda j, m: (m, 0)),
                pl.BlockSpec((Kp, tn), lambda j, m: (0, j)),
            ],
            out_specs=pl.BlockSpec((Kp, tn), lambda j, m: (0, j)),
        ),
        compiler_params=pltpu.CompilerParams(
            dimension_semantics=("parallel", "arbitrary"),
            vmem_limit_bytes=32 * 1024 * 1024,
        ),
        cost_estimate=pl.CostEstimate(
            flops=4 * Mp * Np * Kp,
            transcendentals=0,
            bytes_accessed=4 * (Mp * Kp * (Np // tn) + Kp * Np + Kp * Np),
        ),
    )(A, x)

    if (Kp, Np) != (K, N):
        g_p = g_p[:K, :N]
    return g_p


_gramian_fused_jit = jax.jit(_gramian_fused)


class ConvolutionOperator:
    """JAX/Pallas port of the PyTorch `convolution` LinearOperator."""

    def __init__(self, W, trace_length):
        self.A = jnp.asarray(W, dtype=jnp.float32)
        # Cache the transpose once so adjoint() does not materialize a fresh
        # HBM transpose of A on every call.
        self.AT = jnp.asarray(self.A.T)
        self.trace_len = trace_length

    def forward(self, x):
        return _matmul_jit(self.A, jnp.asarray(x, dtype=jnp.float32))

    def adjoint(self, y):
        return _matmul_jit(self.AT, jnp.asarray(y, dtype=jnp.float32))

    def gramian(self, x):
        x = jnp.asarray(x, dtype=jnp.float32)
        M, K = self.A.shape
        N = x.shape[1]
        if _gramian_fits_vmem(M, K, N):
            return _gramian_fused_jit(self.A, x)
        # Large-K fallback: two tiled matmuls (intermediate round-trips HBM).
        return self.adjoint(self.forward(x))


if __name__ == "__main__":
    key = jax.random.PRNGKey(0)
    k1, k2 = jax.random.split(key)

    # Small, deliberately non-tile-aligned shapes to exercise the padding path:
    # convolution matrix A is (M, K) with K == trace_length, applied to a
    # batch of traces x of shape (K, N).
    trace_length = 200
    M, K, N = 96, trace_length, 50

    A = jax.random.normal(k1, (M, K), dtype=jnp.float32) / jnp.sqrt(K)
    x = jax.random.normal(k2, (K, N), dtype=jnp.float32)

    op = ConvolutionOperator(A, trace_length)

    y = jax.block_until_ready(op.forward(x))
    z = jax.block_until_ready(op.adjoint(y))
    g = jax.block_until_ready(op.gramian(x))

    # Sanity-check against plain JAX matmuls.
    y_ref = A @ x
    z_ref = A.T @ y_ref
    g_ref = A.T @ (A @ x)
    assert jnp.allclose(y, y_ref, atol=1e-4, rtol=1e-4)
    assert jnp.allclose(z, z_ref, atol=1e-3, rtol=1e-3)
    assert jnp.allclose(g, g_ref, atol=1e-3, rtol=1e-3)

    print("KERNEL_OK")
</pallas_src>

<mosaic_0001>
module attributes {stable_mosaic.version = 11 : i64} {
  func.func @_matmul_kernel(%arg0: i32, %arg1: i32, %arg2: i32, %arg3: memref<96x256xf32, #tpu.memory_space<vmem>>, %arg4: memref<256x128xf32, #tpu.memory_space<vmem>>, %arg5: memref<96x128xf32, #tpu.memory_space<vmem>>) attributes {dimension_semantics = [#tpu.dimension_semantics<parallel>, #tpu.dimension_semantics<parallel>, #tpu.dimension_semantics<arbitrary>], iteration_bounds = array<i64: 1, 1, 1>, scalar_prefetch = 0 : i64, scratch_operands = 0 : i64, tpu.core_type = #tpu.core_type<tc>, window_params = [{transform_indices = @transform_0, window_bounds = array<i64: 96, 256>}, {transform_indices = @transform_1, window_bounds = array<i64: 256, 128>}, {transform_indices = @transform_2, window_bounds = array<i64: 96, 128>}]} {
    %c0_i32 = arith.constant 0 : i32
    %0 = arith.cmpi eq, %arg2, %c0_i32 : i32
    %1 = arith.extui %0 : i1 to i32
    %c0_i32_0 = arith.constant 0 : i32
    %2 = arith.cmpi ne, %1, %c0_i32_0 : i32
    scf.if %2 {
      %cst_8 = arith.constant 0.000000e+00 : f32
      %9 = vector.broadcast %cst_8 : f32 to vector<96x128xf32>
      %c0_9 = arith.constant 0 : index
      %c0_10 = arith.constant 0 : index
      %10 = vector.load %arg5[%c0_9, %c0_10] : memref<96x128xf32, #tpu.memory_space<vmem>>, vector<96x128xf32>
      tpu.vector_store %arg5[%c0_9, %c0_10], %9 {strides = array<i32>} : memref<96x128xf32, #tpu.memory_space<vmem>>, vector<96x128xf32>,
    } else {
    }
    %c0 = arith.constant 0 : index
    %c0_1 = arith.constant 0 : index
    %3 = vector.load %arg5[%c0, %c0_1] : memref<96x128xf32, #tpu.memory_space<vmem>>, vector<96x128xf32>
    %c0_2 = arith.constant 0 : index
    %c0_3 = arith.constant 0 : index
    %4 = vector.load %arg3[%c0_2, %c0_3] : memref<96x256xf32, #tpu.memory_space<vmem>>, vector<96x256xf32>
    %c0_4 = arith.constant 0 : index
    %c0_5 = arith.constant 0 : index
    %5 = vector.load %arg4[%c0_4, %c0_5] : memref<256x128xf32, #tpu.memory_space<vmem>>, vector<256x128xf32>
    %cst = arith.constant dense<0.000000e+00> : vector<96x128xf32>
    %6 = tpu.matmul %4, %5, %cst {dimension_numbers = #tpu.dot_dimension_numbers<[1], [0], [0], [1], [0, 0, 1, 1], [], []>} : vector<96x256xf32>, vector<256x128xf32>, vector<96x128xf32> -> vector<96x128xf32>
    %7 = arith.addf %3, %6 : vector<96x128xf32>
    %c0_6 = arith.constant 0 : index
    %c0_7 = arith.constant 0 : index
    %8 = vector.load %arg5[%c0_6, %c0_7] : memref<96x128xf32, #tpu.memory_space<vmem>>, vector<96x128xf32>
    tpu.vector_store %arg5[%c0_6, %c0_7], %7 {strides = array<i32>} : memref<96x128xf32, #tpu.memory_space<vmem>>, vector<96x128xf32>,
    return
  }
  func.func @transform_0(%arg0: i32, %arg1: i32, %arg2: i32) -> (i32, i32) {
    %c0_i32 = arith.constant 0 : i32
    return %arg0, %arg2 : i32, i32
  }
  func.func @transform_1(%arg0: i32, %arg1: i32, %arg2: i32) -> (i32, i32) {
    %c0_i32 = arith.constant 0 : i32
    return %arg2, %arg1 : i32, i32
  }
  func.func @transform_2(%arg0: i32, %arg1: i32, %arg2: i32) -> (i32, i32) {
    %c0_i32 = arith.constant 0 : i32
    return %arg0, %arg1 : i32, i32
  }
}

</mosaic_0001>

<bundles_post_ra>
// kernel: _matmul.1
= control target key start
LH: loop header
LB: loop body
LE: loop exit
PB: predicated region body
PF: predicated region fallthrough
CT: control target
= control target key end

     0   :  { %s584_s1 = inlined_call_operand.vmem [shape: f32[256,128], index: 1, kind: input, shape index: {}]   ;;  %s585_s0 = inlined_call_operand.vmem [shape: f32[96,256], index: 0, kind: input, shape index: {}]   ;;  %s586_s2 = inlined_call_operand.vmem [shape: f32[96,128], index: 2, kind: output, shape index: {}]  }
   0x1   :  { %v79_v0 = vld [vmem:[%s584_s1 + $0x80] sm:$0xff]  ;;  %v80_v1 = vld [vmem:[%s584_s1 + $0x88] sm:$0xff]  ;;  %v81_v5 = vld [vmem:[%s584_s1 + $0x90] sm:$0xff] }
   0x2   :  { %v63_v2 = vld [vmem:[%s584_s1] sm:$0xff]  ;;  %v316_v3 = vpack.c.bf16 %v80_v1, %v79_v0  ;;  %v64_v4 = vld [vmem:[%s584_s1 + $0x8] sm:$0xff]  ;;  %v82_v6 = vld [vmem:[%s584_s1 + $0x98] sm:$0xff] }
   0x3   :  { %v318_v7 = vpack.c.bf16 %v64_v4, %v63_v2  ;;  %v320_v8 = vpack.c.bf16 %v82_v6, %v81_v5  ;;  %v65_v9 = vld [vmem:[%s584_s1 + $0x10] sm:$0xff]  ;;  %v66_v10 = vld [vmem:[%s584_s1 + $0x18] sm:$0xff]  ;;  %v83_v11 = vld [vmem:[%s584_s1 + $0xa0] sm:$0xff] }
   0x4   :  { %317 = vmatprep.subr.bf16.mxu0 %v316_v3  ;;  %348 = vmatprep.subr.bf16.mxu1 %v316_v3  ;;  %v84_v12 = vld [vmem:[%s584_s1 + $0xa8] sm:$0xff]  ;;  %v322_v13 = vpack.c.bf16 %v66_v10, %v65_v9  ;;  %v67_v15 = vld [vmem:[%s584_s1 + $0x20] sm:$0xff]  ;;  %v85_v17 = vld [vmem:[%s584_s1 + $0xb0] sm:$0xff] }
   0x5   :  { %319 = vmatpush3.bf16.msra.mxu0 %v318_v7  ;;  %356 = vmatpush3.bf16.msra.mxu1 %v318_v7  ;;  %v324_v14 = vpack.c.bf16 %v84_v12, %v83_v11  ;;  %v68_v16 = vld [vmem:[%s584_s1 + $0x28] sm:$0xff]  ;;  %v86_v18 = vld [vmem:[%s584_s1 + $0xb8] sm:$0xff]  ;;  %v69_v21 = vld [vmem:[%s584_s1 + $0x30] sm:$0xff] }
   0x6   :  { %321 = vmatprep.subr.bf16.mxu0 %v320_v8  ;;  %349 = vmatprep.subr.bf16.mxu1 %v320_v8  ;;  %v326_v19 = vpack.c.bf16 %v68_v16, %v67_v15  ;;  %v328_v20 = vpack.c.bf16 %v86_v18, %v85_v17  ;;  %v70_v22 = vld [vmem:[%s584_s1 + $0x38] sm:$0xff]  ;;  %v87_v23 = vld [vmem:[%s584_s1 + $0xc0] sm:$0xff]  ;;  %v88_v24 = vld [vmem:[%s584_s1 + $0xc8] sm:$0xff] }
   0x7   :  { %v40_v25 = vld [vmem:[%s585_s0 + $0x8] sm:$0xff]  ;;  %v330_v27 = vpack.c.bf16 %v70_v22, %v69_v21  ;;  %v332_v28 = vpack.c.bf16 %v88_v24, %v87_v23  ;;  %v71_v29 = vld [vmem:[%s584_s1 + $0x40] sm:$0xff]  ;;  %v89_v31 = vld [vmem:[%s584_s1 + $0xd0] sm:$0xff] }
   0x8   :  { %159 = vmatprep.mubr.f32.mxu0 %v40_v25  ;;  %v52_v26 = vld [vmem:[%s585_s0 + $0x68] sm:$0xff]  ;;  %v90_v32 = vld [vmem:[%s584_s1 + $0xd8] sm:$0xff]  ;;  %v73_v35 = vld [vmem:[%s584_s1 + $0x50] sm:$0xff] }
   0x9   :  { %323 = vmatpush3.bf16.msra.mxu0 %v322_v13  ;;  %357 = vmatpush3.bf16.msra.mxu1 %v322_v13  ;;  %v72_v30 = vld [vmem:[%s584_s1 + $0x48] sm:$0xff]  ;;  %v336_v34 = vpack.c.bf16 %v90_v32, %v89_v31  ;;  %v74_v36 = vld [vmem:[%s584_s1 + $0x58] sm:$0xff]  ;;  %v91_v37 = vld [vmem:[%s584_s1 + $0xe0] sm:$0xff] }
   0xa   :  { %325 = vmatprep.subr.bf16.mxu0 %v324_v14  ;;  %350 = vmatprep.subr.bf16.mxu1 %v324_v14  ;;  %v334_v33 = vpack.c.bf16 %v72_v30, %v71_v29  ;;  %v92_v38 = vld [vmem:[%s584_s1 + $0xe8] sm:$0xff]  ;;  %v338_v39 = vpack.c.bf16 %v74_v36, %v73_v35  ;;  %v75_v41 = vld [vmem:[%s584_s1 + $0x60] sm:$0xff]  ;;  %v93_v43 = vld [vmem:[%s584_s1 + $0xf0] sm:$0xff] }
   0xb   :  { %189 = vmatprep.mubr.f32.mxu1 %v52_v26  ;;  %v340_v40 = vpack.c.bf16 %v92_v38, %v91_v37  ;;  %v76_v42 = vld [vmem:[%s584_s1 + $0x68] sm:$0xff]  ;;  %v94_v44 = vld [vmem:[%s584_s1 + $0xf8] sm:$0xff]  ;;  %v77_v47 = vld [vmem:[%s584_s1 + $0x70] sm:$0xff] }
   0xc   :  { %v342_v45 = vpack.c.bf16 %v76_v42, %v75_v41  ;;  %v344_v46 = vpack.c.bf16 %v94_v44, %v93_v43  ;;  %v78_v48 = vld [vmem:[%s584_s1 + $0x78] sm:$0xff]  ;;  %v39_v50 = vld [vmem:[%s585_s0] sm:$0xff]  ;;  %v41_v54 = vld [vmem:[%s585_s0 + $0x10] sm:$0xff] }
   0xd   :  { %327 = vmatpush3.bf16.msra.mxu0 %v326_v19  ;;  %358 = vmatpush3.bf16.msra.mxu1 %v326_v19  ;;  %v346_v49 = vpack.c.bf16 %v78_v48, %v77_v47  ;;  %v51_v51 = vld [vmem:[%s585_s0 + $0x60] sm:$0xff]  ;;  %v42_v52 = vld [vmem:[%s585_s0 + $0x18] sm:$0xff]  ;;  %v53_v55 = vld [vmem:[%s585_s0 + $0x70] sm:$0xff] }
   0xe   :  { %329 = vmatprep.subr.bf16.mxu0 %v328_v20  ;;  %351 = vmatprep.subr.bf16.mxu1 %v328_v20  ;;  %v54_v53 = vld [vmem:[%s585_s0 + $0x78] sm:$0xff]  ;;  %v44_v56 = vld [vmem:[%s585_s0 + $0x28] sm:$0xff]  ;;  %v43_v58 = vld [vmem:[%s585_s0 + $0x20] sm:$0xff] }
   0xf   :  { %v56_v57 = vld [vmem:[%s585_s0 + $0x88] sm:$0xff]  ;;  %v55_v59 = vld [vmem:[%s585_s0 + $0x80] sm:$0xff]  ;;  %v46_v60 = vld [vmem:[%s585_s0 + $0x38] sm:$0xff] }
  0x10   :  { %v58_v61 = vld [vmem:[%s585_s0 + $0x98] sm:$0xff]  ;;  %v45_v62 = vld [vmem:[%s585_s0 + $0x30] sm:$0xff]  ;;  %v48_v0 = vld [vmem:[%s585_s0 + $0x48] sm:$0xff] }
  0x11   :  { %331 = vmatpush3.bf16.msra.mxu0 %v330_v27  ;;  %359 = vmatpush3.bf16.msra.mxu1 %v330_v27  ;;  %v57_v63 = vld [vmem:[%s585_s0 + $0x90] sm:$0xff]  ;;  %v60_v1 = vld [vmem:[%s585_s0 + $0xa8] sm:$0xff]  ;;  %v47_v2 = vld [vmem:[%s585_s0 + $0x40] sm:$0xff] }
  0x12   :  { %333 = vmatprep.subr.bf16.mxu0 %v332_v28  ;;  %352 = vmatprep.subr.bf16.mxu1 %v332_v28  ;;  %v59_v3 = vld [vmem:[%s585_s0 + $0xa0] sm:$0xff]  ;;  %v50_v4 = vld [vmem:[%s585_s0 + $0x58] sm:$0xff]  ;;  %v49_v6 = vld [vmem:[%s585_s0 + $0x50] sm:$0xff] }
  0x13   :  { %v62_v5 = vld [vmem:[%s585_s0 + $0xb8] sm:$0xff]  ;;  %v61_v7 = vld [vmem:[%s585_s0 + $0xb0] sm:$0xff] }
  0x15   :  { %335 = vmatpush3.bf16.msra.mxu0 %v334_v33  ;;  %360 = vmatpush3.bf16.msra.mxu1 %v334_v33 }
  0x16   :  { %337 = vmatprep.subr.bf16.mxu0 %v336_v34  ;;  %353 = vmatprep.subr.bf16.mxu1 %v336_v34 }
  0x19   :  { %339 = vmatpush3.bf16.msra.mxu0 %v338_v39  ;;  %361 = vmatpush3.bf16.msra.mxu1 %v338_v39 }
  0x1a   :  { %341 = vmatprep.subr.bf16.mxu0 %v340_v40  ;;  %354 = vmatprep.subr.bf16.mxu1 %v340_v40 }
  0x1d   :  { %343 = vmatpush3.bf16.msra.mxu0 %v342_v45  ;;  %362 = vmatpush3.bf16.msra.mxu1 %v342_v45 }
  0x1e   :  { %345 = vmatprep.subr.bf16.mxu0 %v344_v46  ;;  %355 = vmatprep.subr.bf16.mxu1 %v344_v46 }
  0x21   :  { %347 = vmatpush3.bf16.msra.mxu0 %v346_v49  ;;  %363 = vmatpush3.bf16.msra.mxu1 %v346_v49 }
  0x24   :  { %160 = vmatmul.mubr.f32.vlgmr.msra.gmra.mrb[0].mxu0 %v39_v50  ;;  %190 = vmatmul.mubr.f32.vlgmr.msra.gmra.mrb[0].mxu1 %v51_v51 }
  0x25   :  { %164 = vmatprep.mubr.f32.mxu0 %v42_v52  ;;  %194 = vmatprep.mubr.f32.mxu1 %v54_v53 }
  0x28   :  { %165 = vmatmul.mubr.f32.gmra.mrb[2].mxu0 %v41_v54  ;;  %195 = vmatmul.mubr.f32.gmra.mrb[2].mxu1 %v53_v55 }
  0x29   :  { %169 = vmatprep.mubr.f32.mxu0 %v44_v56  ;;  %199 = vmatprep.mubr.f32.mxu1 %v56_v57 }
  0x2c   :  { %170 = vmatmul.mubr.f32.gmra.mrb[4].mxu0 %v43_v58  ;;  %200 = vmatmul.mubr.f32.gmra.mrb[4].mxu1 %v55_v59 }
  0x2d   :  { %174 = vmatprep.mubr.f32.mxu0 %v46_v60  ;;  %204 = vmatprep.mubr.f32.mxu1 %v58_v61 }
  0x30   :  { %175 = vmatmul.mubr.f32.gmra.mrb[6].mxu0 %v45_v62  ;;  %205 = vmatmul.mubr.f32.gmra.mrb[6].mxu1 %v57_v63 }
  0x31   :  { %179 = vmatprep.mubr.f32.mxu0 %v48_v0  ;;  %209 = vmatprep.mubr.f32.mxu1 %v60_v1 }
  0x34   :  { %180 = vmatmul.mubr.f32.gmra.mrb[8].mxu0 %v47_v2  ;;  %210 = vmatmul.mubr.f32.gmra.mrb[8].mxu1 %v59_v3 }
  0x35   :  { %184 = vmatprep.mubr.f32.mxu0 %v50_v4  ;;  %214 = vmatprep.mubr.f32.mxu1 %v62_v5 }
  0x38   :  { %185 = vmatmul.mubr.f32.gmra.mrb[10].mxu0 %v49_v6  ;;  %215 = vmatmul.mubr.f32.gmra.mrb[10].mxu1 %v61_v7 }
  0xf7   :  { %v280_v8 = vpop.f32.mrb[0].mxu0  ;;  %v298_v9 = vpop.f32.mrb[0].mxu1 }
  0xf8   :  { %v281_v10 = vpop.f32.mrb[1].mxu0  ;;  %v299_v11 = vpop.f32.mrb[1].mxu1 }
  0xf9   :  { %v282_v12 = vadd.f32 %v281_v10, %v280_v8  ;;  %v300_v13 = vadd.f32 %v299_v11, %v298_v9 }
  0xfb   :  { %v283_v14 = vpop.f32.mrb[2].mxu0  ;;  %v301_v15 = vpop.f32.mrb[2].mxu1  ;;  %232 = vst [vmem:[%s586_s2] sm:$0xff] %v282_v12  ;;  %238 = vst [vmem:[%s586_s2 + $0x30] sm:$0xff] %v300_v13 }
  0xfc   :  { %v284_v16 = vpop.f32.mrb[3].mxu0  ;;  %v302_v17 = vpop.f32.mrb[3].mxu1 }
  0xfd   :  { %v285_v18 = vadd.f32 %v284_v16, %v283_v14  ;;  %v303_v19 = vadd.f32 %v302_v17, %v301_v15 }
  0xff   :  { %v286_v20 = vpop.f32.mrb[4].mxu0  ;;  %v304_v21 = vpop.f32.mrb[4].mxu1  ;;  %233 = vst [vmem:[%s586_s2 + $0x8] sm:$0xff] %v285_v18  ;;  %239 = vst [vmem:[%s586_s2 + $0x38] sm:$0xff] %v303_v19 }
 0x100   :  { %v287_v22 = vpop.f32.mrb[5].mxu0  ;;  %v305_v23 = vpop.f32.mrb[5].mxu1 }
 0x101   :  { %v288_v24 = vadd.f32 %v287_v22, %v286_v20  ;;  %v306_v25 = vadd.f32 %v305_v23, %v304_v21 }
 0x103   :  { %v289_v26 = vpop.f32.mrb[6].mxu0  ;;  %v307_v27 = vpop.f32.mrb[6].mxu1  ;;  %234 = vst [vmem:[%s586_s2 + $0x10] sm:$0xff] %v288_v24  ;;  %240 = vst [vmem:[%s586_s2 + $0x40] sm:$0xff] %v306_v25 }
 0x104   :  { %v290_v28 = vpop.f32.mrb[7].mxu0  ;;  %v308_v29 = vpop.f32.mrb[7].mxu1 }
 0x105   :  { %v291_v30 = vadd.f32 %v290_v28, %v289_v26  ;;  %v309_v31 = vadd.f32 %v308_v29, %v307_v27 }
 0x107   :  { %v292_v32 = vpop.f32.mrb[8].mxu0  ;;  %v310_v33 = vpop.f32.mrb[8].mxu1  ;;  %235 = vst [vmem:[%s586_s2 + $0x18] sm:$0xff] %v291_v30  ;;  %241 = vst [vmem:[%s586_s2 + $0x48] sm:$0xff] %v309_v31 }
 0x108   :  { %v293_v34 = vpop.f32.mrb[9].mxu0  ;;  %v311_v35 = vpop.f32.mrb[9].mxu1 }
 0x109   :  { %v294_v36 = vadd.f32 %v293_v34, %v292_v32  ;;  %v312_v37 = vadd.f32 %v311_v35, %v310_v33 }
 0x10b   :  { %v295_v38 = vpop.f32.mrb[10].mxu0  ;;  %v313_v39 = vpop.f32.mrb[10].mxu1  ;;  %236 = vst [vmem:[%s586_s2 + $0x20] sm:$0xff] %v294_v36  ;;  %242 = vst [vmem:[%s586_s2 + $0x50] sm:$0xff] %v312_v37 }
 0x10c   :  { %v296_v40 = vpop.f32.mrb[11].mxu0  ;;  %v314_v41 = vpop.f32.mrb[11].mxu1 }
 0x10d   :  { %v297_v42 = vadd.f32 %v296_v40, %v295_v38  ;;  %v315_v43 = vadd.f32 %v314_v41, %v313_v39 }
 0x10f   :  { %237 = vst [vmem:[%s586_s2 + $0x28] sm:$0xff] %v297_v42  ;;  %243 = vst [vmem:[%s586_s2 + $0x58] sm:$0xff] %v315_v43 }

</bundles_post_ra>
